<compile_context>
chip_gen: v7x
topology: tpu7x:2x2x1
jax: 0.10.0
libtpu: 0.0.40
codegen_flags: <defaults>
</compile_context>

<pallas_src>
import math

import jax
import jax.numpy as jnp
from jax.experimental import pallas as pl
from jax.experimental.pallas import tpu as pltpu


# ----------------------------------------------------------------------------
# Pallas kernel: fused ModifiedMLP forward for one batch tile, transposed
# (features, batch) layout. Layer count is a Python constant -> fully unrolled.
# ----------------------------------------------------------------------------
def _make_modified_mlp_kernel(num_hidden, use_bf16_matmul):
    """num_hidden = number of gated hidden linears (= len(Ws) - 1)."""

    # Optionally feed the MXU bf16 operands (full-rate on v6e/v7x). Weights are
    # already bf16 (pre-cast in the wrapper); only activations need casting.
    if use_bf16_matmul:
        cast = lambda a: a.astype(jnp.bfloat16)
    else:
        cast = lambda a: a

    def kernel(*refs):
        # refs: x, Wuv, buv, (W_i, b_i) * (num_hidden + 1), out
        x_ref = refs[0]
        wuv_ref, buv_ref = refs[1], refs[2]
        lin_refs = refs[3:3 + 2 * (num_hidden + 1)]
        o_ref = refs[3 + 2 * (num_hidden + 1)]

        x = x_ref[...]                                    # (d_in, tile_m) f32
        xm = cast(x)                                      # MXU operand dtype

        # Fused U/V projection: one matmul, one bias add, one tanh, then split.
        uv = jnp.tanh(
            jnp.dot(wuv_ref[...], xm, preferred_element_type=jnp.float32)
            + buv_ref[...])                               # (2H, tile_m) f32
        hidden = uv.shape[0] // 2
        U = uv[:hidden]                                   # 8-aligned sublane slice
        V = uv[hidden:]
        D = U - V                                         # hoisted gate term

        hm = xm
        for i in range(num_hidden):
            W = lin_refs[2 * i][...]                      # (out, in)
            b = lin_refs[2 * i + 1][...]                  # (out, 1) f32
            h = jnp.tanh(
                jnp.dot(W, hm, preferred_element_type=jnp.float32) + b)
            h = V + h * D                                 # == h*U + (1-h)*V
            hm = cast(h)

        # final linear (no activation, no gating)
        Wl = lin_refs[-2][...]
        bl = lin_refs[-1][...]
        o_ref[...] = (
            jnp.dot(Wl, hm, preferred_element_type=jnp.float32) + bl
        ).astype(o_ref.dtype)

    return kernel


def modified_mlp_forward(x, params, *, tile_m=256, use_bf16_matmul=False):
    """Run the ModifiedMLP forward pass with a Pallas TPU kernel.

    x:      (N, d_in) float32, batch-major (like the PyTorch module)
    params: dict with
              Wuv (2*hidden, d_in), buv (2*hidden, 1)   -- fused U1/U2 projection
              Ws  list of (out, in) weights (PyTorch nn.Linear layout)
              bs  list of (out, 1) biases
    Returns (N, d_out) float32.
    """
    N, d_in = x.shape
    num_linears = len(params["Ws"])
    d_out = params["Ws"][-1].shape[0]

    # Matmul-operand dtype (weights pre-cast once here; biases stay f32).
    mm_dtype = jnp.bfloat16 if use_bf16_matmul else jnp.float32
    Wuv = params["Wuv"].astype(mm_dtype)
    buv = params["buv"]
    Ws = [W.astype(mm_dtype) for W in params["Ws"]]
    bs = params["bs"]

    # Lane-dense layout: put the batch axis last (lanes), features on sublanes.
    xT = x.T                                              # (d_in, N)
    n_pad = ((N + tile_m - 1) // tile_m) * tile_m
    if n_pad != N:
        xT = jnp.pad(xT, ((0, 0), (0, n_pad - N)))

    kernel = _make_modified_mlp_kernel(num_linears - 1, use_bf16_matmul)

    # Weights/biases are tiny: load whole, constant index_map -> stay resident
    # in VMEM across all grid steps.
    _const2d = lambda i: (0, 0)

    def full_spec(arr):
        return pl.BlockSpec(arr.shape, _const2d)

    in_specs = [pl.BlockSpec((d_in, tile_m), lambda i: (0, i))]
    in_specs += [full_spec(Wuv), full_spec(buv)]
    flat_wb = []
    for W, b in zip(Ws, bs):
        in_specs += [full_spec(W), full_spec(b)]
        flat_wb += [W, b]

    out_spec = pl.BlockSpec((d_out, tile_m), lambda i: (0, i))

    fn = pl.pallas_call(
        kernel,
        out_shape=jax.ShapeDtypeStruct((d_out, n_pad), jnp.float32),
        grid_spec=pltpu.PrefetchScalarGridSpec(
            num_scalar_prefetch=0,
            grid=(n_pad // tile_m,),
            in_specs=in_specs,
            out_specs=out_spec,
        ),
        compiler_params=pltpu.CompilerParams(
            dimension_semantics=("parallel",)),
    )
    outT = fn(xT, Wuv, buv, *flat_wb)                     # (d_out, n_pad)
    return outT[:, :N].T                                  # (N, d_out)


# ----------------------------------------------------------------------------
# Deterministic parameter init (xavier_normal_ for weights, zeros for biases),
# mirroring ModifiedMLP._initialize_weights. Weights are kept in PyTorch
# layout ((d_in, hidden) for U1/U2, (out, in) for linears); the fused Wuv is
# built from U1/U2 for the kernel.
# ----------------------------------------------------------------------------
def init_params(key, layers):
    def xavier_normal(k, shape, fan_in, fan_out):
        std = math.sqrt(2.0 / (fan_in + fan_out))
        return std * jax.random.normal(k, shape, dtype=jnp.float32)

    nlin = len(layers) - 1
    keys = jax.random.split(key, 2 + nlin)
    d_in, hidden = layers[0], layers[1]

    U1 = xavier_normal(keys[0], (d_in, hidden), d_in, hidden)
    U2 = xavier_normal(keys[1], (d_in, hidden), d_in, hidden)

    Ws, bs = [], []
    for i in range(nlin):
        fi, fo = layers[i], layers[i + 1]
        Ws.append(xavier_normal(keys[2 + i], (fo, fi), fi, fo))  # (out, in)
        bs.append(jnp.zeros((fo, 1), jnp.float32))

    return {
        # kernel-side fused U/V projection: h_uv = tanh(Wuv @ x^T + buv)
        "Wuv": jnp.concatenate([U1.T, U2.T], axis=0),     # (2*hidden, d_in)
        "buv": jnp.zeros((2 * hidden, 1), jnp.float32),
        "Ws": Ws,
        "bs": bs,
        # originals for the pure-JAX reference
        "U1": U1,
        "U2": U2,
        "b1": jnp.zeros((hidden,), jnp.float32),
        "b2": jnp.zeros((hidden,), jnp.float32),
    }


# Pure-JAX reference (batch-major, exactly the PyTorch forward).
def modified_mlp_reference(x, params):
    act = jnp.tanh
    U = act(x @ params["U1"] + params["b1"])
    V = act(x @ params["U2"] + params["b2"])
    h = x
    for W, b in zip(params["Ws"][:-1], params["bs"][:-1]):
        h = act(h @ W.T + b[:, 0])
        h = h * U + (1.0 - h) * V
    Wl, bl = params["Ws"][-1], params["bs"][-1]
    return h @ Wl.T + bl[:, 0]


if __name__ == "__main__":
    # layers = [in, hidden, ..., out]; batch deliberately NOT a multiple of
    # tile_m to exercise the padding path. Padded grid = 512/256 = 2 steps
    # (even -> both v7x TensorCores busy with dimension_semantics=("parallel",)).
    layers = [8, 32, 32, 32, 4]
    batch = 500

    key = jax.random.PRNGKey(0)
    kx, kp = jax.random.split(key)
    x = jax.random.normal(kx, (batch, layers[0]), dtype=jnp.float32)
    params = init_params(kp, layers)

    ref = modified_mlp_reference(x, params)

    # f32 path: exact match against the reference.
    out = jax.block_until_ready(modified_mlp_forward(x, params, tile_m=256))
    assert out.shape == (batch, layers[-1])
    assert jnp.allclose(out, ref, atol=1e-5, rtol=1e-5), "f32 mismatch vs reference"

    # bf16 MXU-input path (v6e/v7x full-rate matmuls): loose tolerance.
    out_bf16 = jax.block_until_ready(
        modified_mlp_forward(x, params, tile_m=256, use_bf16_matmul=True))
    assert jnp.allclose(out_bf16, ref, atol=5e-2, rtol=5e-2), "bf16 mismatch vs reference"

    print("KERNEL_OK")
</pallas_src>

<mosaic_0001>
module attributes {stable_mosaic.version = 11 : i64} {
  func.func @kernel(%arg0: i32, %arg1: memref<8x256xf32, #tpu.memory_space<vmem>>, %arg2: memref<64x8xf32, #tpu.memory_space<vmem>>, %arg3: memref<64x1xf32, #tpu.memory_space<vmem>>, %arg4: memref<32x8xf32, #tpu.memory_space<vmem>>, %arg5: memref<32x1xf32, #tpu.memory_space<vmem>>, %arg6: memref<32x32xf32, #tpu.memory_space<vmem>>, %arg7: memref<32x1xf32, #tpu.memory_space<vmem>>, %arg8: memref<32x32xf32, #tpu.memory_space<vmem>>, %arg9: memref<32x1xf32, #tpu.memory_space<vmem>>, %arg10: memref<4x32xf32, #tpu.memory_space<vmem>>, %arg11: memref<4x1xf32, #tpu.memory_space<vmem>>, %arg12: memref<4x256xf32, #tpu.memory_space<vmem>>) attributes {dimension_semantics = [#tpu.dimension_semantics<parallel>], iteration_bounds = array<i64: 2>, scalar_prefetch = 0 : i64, scratch_operands = 0 : i64, tpu.core_type = #tpu.core_type<tc>, window_params = [{transform_indices = @transform_0, window_bounds = array<i64: 8, 256>}, {pipeline_mode = #tpu.pipeline_mode<synchronous>, transform_indices = @transform_1, window_bounds = array<i64: 64, 8>}, {pipeline_mode = #tpu.pipeline_mode<synchronous>, transform_indices = @transform_2, window_bounds = array<i64: 64, 1>}, {pipeline_mode = #tpu.pipeline_mode<synchronous>, transform_indices = @transform_3, window_bounds = array<i64: 32, 8>}, {pipeline_mode = #tpu.pipeline_mode<synchronous>, transform_indices = @transform_4, window_bounds = array<i64: 32, 1>}, {pipeline_mode = #tpu.pipeline_mode<synchronous>, transform_indices = @transform_5, window_bounds = array<i64: 32, 32>}, {pipeline_mode = #tpu.pipeline_mode<synchronous>, transform_indices = @transform_6, window_bounds = array<i64: 32, 1>}, {pipeline_mode = #tpu.pipeline_mode<synchronous>, transform_indices = @transform_7, window_bounds = array<i64: 32, 32>}, {pipeline_mode = #tpu.pipeline_mode<synchronous>, transform_indices = @transform_8, window_bounds = array<i64: 32, 1>}, {pipeline_mode = #tpu.pipeline_mode<synchronous>, transform_indices = @transform_9, window_bounds = array<i64: 4, 32>}, {pipeline_mode = #tpu.pipeline_mode<synchronous>, transform_indices = @transform_10, window_bounds = array<i64: 4, 1>}, {transform_indices = @transform_11, window_bounds = array<i64: 4, 256>}]} {
    %c0 = arith.constant 0 : index
    %c0_0 = arith.constant 0 : index
    %0 = vector.load %arg1[%c0, %c0_0] : memref<8x256xf32, #tpu.memory_space<vmem>>, vector<8x256xf32>
    %c0_1 = arith.constant 0 : index
    %c0_2 = arith.constant 0 : index
    %1 = vector.load %arg2[%c0_1, %c0_2] : memref<64x8xf32, #tpu.memory_space<vmem>>, vector<64x8xf32>
    %cst = arith.constant dense<0.000000e+00> : vector<64x256xf32>
    %2 = tpu.matmul %1, %0, %cst {dimension_numbers = #tpu.dot_dimension_numbers<[1], [0], [0], [1], [0, 0, 1, 1], [], []>} : vector<64x8xf32>, vector<8x256xf32>, vector<64x256xf32> -> vector<64x256xf32>
    %c0_3 = arith.constant 0 : index
    %c0_4 = arith.constant 0 : index
    %3 = vector.load %arg3[%c0_3, %c0_4] : memref<64x1xf32, #tpu.memory_space<vmem>>, vector<64x1xf32>
    %4 = vector.broadcast %3 : vector<64x1xf32> to vector<64x256xf32>
    %5 = arith.addf %2, %4 : vector<64x256xf32>
    %6 = math.tanh %5 : vector<64x256xf32>
    %7 = vector.extract_strided_slice %6 {offsets = [0, 0], sizes = [32, 256], strides = [1, 1]} : vector<64x256xf32> to vector<32x256xf32>
    %8 = vector.extract_strided_slice %6 {offsets = [32, 0], sizes = [32, 256], strides = [1, 1]} : vector<64x256xf32> to vector<32x256xf32>
    %9 = arith.subf %7, %8 : vector<32x256xf32>
    %c0_5 = arith.constant 0 : index
    %c0_6 = arith.constant 0 : index
    %10 = vector.load %arg4[%c0_5, %c0_6] : memref<32x8xf32, #tpu.memory_space<vmem>>, vector<32x8xf32>
    %c0_7 = arith.constant 0 : index
    %c0_8 = arith.constant 0 : index
    %11 = vector.load %arg5[%c0_7, %c0_8] : memref<32x1xf32, #tpu.memory_space<vmem>>, vector<32x1xf32>
    %cst_9 = arith.constant dense<0.000000e+00> : vector<32x256xf32>
    %12 = tpu.matmul %10, %0, %cst_9 {dimension_numbers = #tpu.dot_dimension_numbers<[1], [0], [0], [1], [0, 0, 1, 1], [], []>} : vector<32x8xf32>, vector<8x256xf32>, vector<32x256xf32> -> vector<32x256xf32>
    %13 = vector.broadcast %11 : vector<32x1xf32> to vector<32x256xf32>
    %14 = arith.addf %12, %13 : vector<32x256xf32>
    %15 = math.tanh %14 : vector<32x256xf32>
    %16 = arith.mulf %15, %9 : vector<32x256xf32>
    %17 = arith.addf %8, %16 : vector<32x256xf32>
    %c0_10 = arith.constant 0 : index
    %c0_11 = arith.constant 0 : index
    %18 = vector.load %arg6[%c0_10, %c0_11] : memref<32x32xf32, #tpu.memory_space<vmem>>, vector<32x32xf32>
    %c0_12 = arith.constant 0 : index
    %c0_13 = arith.constant 0 : index
    %19 = vector.load %arg7[%c0_12, %c0_13] : memref<32x1xf32, #tpu.memory_space<vmem>>, vector<32x1xf32>
    %cst_14 = arith.constant dense<0.000000e+00> : vector<32x256xf32>
    %20 = tpu.matmul %18, %17, %cst_14 {dimension_numbers = #tpu.dot_dimension_numbers<[1], [0], [0], [1], [0, 0, 1, 1], [], []>} : vector<32x32xf32>, vector<32x256xf32>, vector<32x256xf32> -> vector<32x256xf32>
    %21 = vector.broadcast %19 : vector<32x1xf32> to vector<32x256xf32>
    %22 = arith.addf %20, %21 : vector<32x256xf32>
    %23 = math.tanh %22 : vector<32x256xf32>
    %24 = arith.mulf %23, %9 : vector<32x256xf32>
    %25 = arith.addf %8, %24 : vector<32x256xf32>
    %c0_15 = arith.constant 0 : index
    %c0_16 = arith.constant 0 : index
    %26 = vector.load %arg8[%c0_15, %c0_16] : memref<32x32xf32, #tpu.memory_space<vmem>>, vector<32x32xf32>
    %c0_17 = arith.constant 0 : index
    %c0_18 = arith.constant 0 : index
    %27 = vector.load %arg9[%c0_17, %c0_18] : memref<32x1xf32, #tpu.memory_space<vmem>>, vector<32x1xf32>
    %cst_19 = arith.constant dense<0.000000e+00> : vector<32x256xf32>
    %28 = tpu.matmul %26, %25, %cst_19 {dimension_numbers = #tpu.dot_dimension_numbers<[1], [0], [0], [1], [0, 0, 1, 1], [], []>} : vector<32x32xf32>, vector<32x256xf32>, vector<32x256xf32> -> vector<32x256xf32>
    %29 = vector.broadcast %27 : vector<32x1xf32> to vector<32x256xf32>
    %30 = arith.addf %28, %29 : vector<32x256xf32>
    %31 = math.tanh %30 : vector<32x256xf32>
    %32 = arith.mulf %31, %9 : vector<32x256xf32>
    %33 = arith.addf %8, %32 : vector<32x256xf32>
    %c0_20 = arith.constant 0 : index
    %c0_21 = arith.constant 0 : index
    %34 = vector.load %arg10[%c0_20, %c0_21] : memref<4x32xf32, #tpu.memory_space<vmem>>, vector<4x32xf32>
    %c0_22 = arith.constant 0 : index
    %c0_23 = arith.constant 0 : index
    %35 = vector.load %arg11[%c0_22, %c0_23] : memref<4x1xf32, #tpu.memory_space<vmem>>, vector<4x1xf32>
    %cst_24 = arith.constant dense<0.000000e+00> : vector<4x256xf32>
    %36 = tpu.matmul %34, %33, %cst_24 {dimension_numbers = #tpu.dot_dimension_numbers<[1], [0], [0], [1], [0, 0, 1, 1], [], []>} : vector<4x32xf32>, vector<32x256xf32>, vector<4x256xf32> -> vector<4x256xf32>
    %37 = vector.broadcast %35 : vector<4x1xf32> to vector<4x256xf32>
    %38 = arith.addf %36, %37 : vector<4x256xf32>
    %c0_25 = arith.constant 0 : index
    %c0_26 = arith.constant 0 : index
    %39 = vector.load %arg12[%c0_25, %c0_26] : memref<4x256xf32, #tpu.memory_space<vmem>>, vector<4x256xf32>
    tpu.vector_store %arg12[%c0_25, %c0_26], %38 {strides = array<i32>} : memref<4x256xf32, #tpu.memory_space<vmem>>, vector<4x256xf32>,
    return
  }
  func.func @transform_0(%arg0: i32) -> (i32, i32) {
    %c0_i32 = arith.constant 0 : i32
    %c0_i32_0 = arith.constant 0 : i32
    return %c0_i32, %arg0 : i32, i32
  }
  func.func @transform_1(%arg0: i32) -> (i32, i32) {
    %c0_i32 = arith.constant 0 : i32
    %c0_i32_0 = arith.constant 0 : i32
    %c0_i32_1 = arith.constant 0 : i32
    return %c0_i32, %c0_i32_0 : i32, i32
  }
  func.func @transform_2(%arg0: i32) -> (i32, i32) {
    %c0_i32 = arith.constant 0 : i32
    %c0_i32_0 = arith.constant 0 : i32
    %c0_i32_1 = arith.constant 0 : i32
    return %c0_i32, %c0_i32_0 : i32, i32
  }
  func.func @transform_3(%arg0: i32) -> (i32, i32) {
    %c0_i32 = arith.constant 0 : i32
    %c0_i32_0 = arith.constant 0 : i32
    %c0_i32_1 = arith.constant 0 : i32
    return %c0_i32, %c0_i32_0 : i32, i32
  }
  func.func @transform_4(%arg0: i32) -> (i32, i32) {
    %c0_i32 = arith.constant 0 : i32
    %c0_i32_0 = arith.constant 0 : i32
    %c0_i32_1 = arith.constant 0 : i32
    return %c0_i32, %c0_i32_0 : i32, i32
  }
  func.func @transform_5(%arg0: i32) -> (i32, i32) {
    %c0_i32 = arith.constant 0 : i32
    %c0_i32_0 = arith.constant 0 : i32
    %c0_i32_1 = arith.constant 0 : i32
    return %c0_i32, %c0_i32_0 : i32, i32
  }
  func.func @transform_6(%arg0: i32) -> (i32, i32) {
    %c0_i32 = arith.constant 0 : i32
    %c0_i32_0 = arith.constant 0 : i32
    %c0_i32_1 = arith.constant 0 : i32
    return %c0_i32, %c0_i32_0 : i32, i32
  }
  func.func @transform_7(%arg0: i32) -> (i32, i32) {
    %c0_i32 = arith.constant 0 : i32
    %c0_i32_0 = arith.constant 0 : i32
    %c0_i32_1 = arith.constant 0 : i32
    return %c0_i32, %c0_i32_0 : i32, i32
  }
  func.func @transform_8(%arg0: i32) -> (i32, i32) {
    %c0_i32 = arith.constant 0 : i32
    %c0_i32_0 = arith.constant 0 : i32
    %c0_i32_1 = arith.constant 0 : i32
    return %c0_i32, %c0_i32_0 : i32, i32
  }
  func.func @transform_9(%arg0: i32) -> (i32, i32) {
    %c0_i32 = arith.constant 0 : i32
    %c0_i32_0 = arith.constant 0 : i32
    %c0_i32_1 = arith.constant 0 : i32
    return %c0_i32, %c0_i32_0 : i32, i32
  }
  func.func @transform_10(%arg0: i32) -> (i32, i32) {
    %c0_i32 = arith.constant 0 : i32
    %c0_i32_0 = arith.constant 0 : i32
    %c0_i32_1 = arith.constant 0 : i32
    return %c0_i32, %c0_i32_0 : i32, i32
  }
  func.func @transform_11(%arg0: i32) -> (i32, i32) {
    %c0_i32 = arith.constant 0 : i32
    %c0_i32_0 = arith.constant 0 : i32
    return %c0_i32, %arg0 : i32, i32
  }
}

</mosaic_0001>

<bundles_post_ra>
// kernel: tpu_custom_call.1
= control target key start
LH: loop header
LB: loop body
LE: loop exit
PB: predicated region body
PF: predicated region fallthrough
CT: control target
= control target key end

     0   :  { %16 = vsyncpa [#allocation3], 0  ;;  %s1897_s0 = inlined_call_operand.vmem [shape: f32[8,512], index: 0, kind: input, shape index: {}]   ;;  %s1898_s1 = inlined_call_operand.vmem [shape: f32[64,8], index: 1, kind: input, shape index: {}]   ;;  %s1899_s2 = inlined_call_operand.vmem [shape: f32[64,1], index: 2, kind: input, shape index: {}]   ;;  %s1900_s3 = inlined_call_operand.vmem [shape: f32[32,8], index: 3, kind: input, shape index: {}]   ;;  %s1901_s4 = inlined_call_operand.vmem [shape: f32[32,1], index: 4, kind: input, shape index: {}]   ;;  %s1902_s5 = inlined_call_operand.vmem [shape: f32[32,32], index: 5, kind: input, shape index: {}]   ;;  %s1903_s6 = inlined_call_operand.vmem [shape: f32[32,1], index: 6, kind: input, shape index: {}]   ;;  %s1904_s7 = inlined_call_operand.vmem [shape: f32[32,32], index: 7, kind: input, shape index: {}]   ;;  %s1905_s8 = inlined_call_operand.vmem [shape: f32[32,1], index: 8, kind: input, shape index: {}]   ;;  %s1906_s9 = inlined_call_operand.vmem [shape: f32[4,32], index: 9, kind: input, shape index: {}]   ;;  %s1907_s10 = inlined_call_operand.vmem [shape: f32[4,1], index: 10, kind: input, shape index: {}]   ;;  %s1908_s11 = inlined_call_operand.hbm [shape: f32[4,512], index: 11, kind: output, shape index: {}]  }
   0x1   :  { %18 = vsyncpa [#allocation3 + $0x1], 0  ;;  %s1538_s17 = smov 0   ;;  %s1540_s18 = smov 0  }
   0x2   :  { %s1542_s19 = smov 0   ;;  %s1544_s20 = smov 0  }
   0x3 LB: > { %s1559_s21 = sadd.s32 4294967295, %s1473_s20   ;;  %s1228_s22 = sadd.s32 4294967294, %s1473_s20   ;;  %s1473_s20 = sphi %s1544_s20, %s1916_s20   ;;  %s1469_s19 = sphi %s1542_s19, %s1915_s19   ;;  %s1465_s18 = sphi %s1540_s18, %s1914_s18   ;;  %s1461_s17 = sphi %s1538_s17, %s1913_s17  }
   0x4   : > { %s1563_s23 = sadd.s32 1, %s1473_s20   ;;  %s267_s24 = sadd.s32 1, %s1469_s19 }
   0x5   : > { %s264_s25 = ssub.s32 %s1473_s20, %s1563_s23  ;;  %p277_p0 = scmp.ne.s32.totalorder %s1469_s19, %s1465_s18 }
   0x6   : > { %p265_p1 = scmp.eq.s32.totalorder %s264_s25, 0  ;;  %p278_p2 = scmp.eq.s32.totalorder %s1559_s21, 1 }
   0x7   : > { %p283_p3 = scmp.ne.s32.totalorder %s1465_s18, %s1461_s17  ;;  %p284_p4 = scmp.eq.s32.totalorder %s1228_s22, 1 }
   0x8   : > { %s1574_s26 = scalar_select %p265_p1, %s1469_s19, %s267_s24  }
   0x9   : > { %p1576_p5 = por %p278_p2, %p277_p0  ;;  %p1580_p6 = por %p284_p4, %p283_p3 }
   0xa   : > { %1909 = sst [smem:[#allocation5_spill]] %s1574_s26  ;;  %p1231_p7 = scmp.ge.s32.totalorder %s1473_s20, 1 }
   0xb   : > { %p341_p8 = scmp.lt.s32.totalorder %s1473_s20, 3 }
   0xd   : > { %p342_p9 = pnand %p1231_p7, %p341_p8 }
   0xe   : > { %s1233_s29 = sshll.u32 (!%p342_p9), %s1559_s21, 1  ;;  %v1475_v0 = vmov (!%p342_p9), 0.0   ;;  %v1476_v1 = vmov (!%p342_p9), 0   ;;  %v398_v2 = vld [vmem:[%s1899_s2] sm:$0xff] (!%p342_p9)  ;;  %vm446_vm0 = vcmask (!%p342_p9), 64512   ;;  %v397_v7 = vld [vmem:[%s1898_s1 + $0x38] sm:$0xff] (!%p342_p9) }
   0xf   : > { %345 = sbr.rel (%p342_p9) target bundleno = 1017 (0x3f9), region = 64  ;;  %p382_p10 = scmp.lt.s32.totalorder (!%p342_p9), %s1233_s29, 3  ;;  %535 = vmatprep.mubr.f32.mxu0 (!%p342_p9), %v1475_v0  ;;  %577 = vmatprep.mubr.f32.mxu1 (!%p342_p9), %v1475_v0  ;;  %v402_v3 = vld [vmem:[%s1899_s2 + $0x20] sm:$0xff] (!%p342_p9)  ;;  %v399_v8 = vld [vmem:[%s1899_s2 + $0x8] sm:$0xff] (!%p342_p9)  ;;  %v392_v14 = vld [vmem:[%s1898_s1 + $0x10] sm:$0xff] (!%p342_p9)  ;;  %vm789_vm1 = vcmask (!%p342_p9), 261120  }
  0x10   : > { %1329 = vset.pattern.permute.xlu0 (!%p342_p9), %v1476_v1  ;;  %1330 = vset.pattern.permute.xlu1 (!%p342_p9), %v1476_v1  ;;  %v390_v4 = vld [vmem:[%s1898_s1] sm:$0xff] (!%p342_p9)  ;;  %v403_v9 = vld [vmem:[%s1899_s2 + $0x28] sm:$0xff] (!%p342_p9)  ;;  %v400_v16 = vld [vmem:[%s1899_s2 + $0x10] sm:$0xff] (!%p342_p9)  ;;  %s378_s12 = sand.u32 (!%p342_p9), 1, %s1465_s18   ;;  %s1261_s13 = sshll.u32 (!%p342_p9), %s1559_s21, 7 }
  0x11   : > { %408 = vperm.xlu0 (!%p342_p9), %1329, %v398_v2   ;;  %428 = vperm.xlu1 (!%p342_p9), %1330, %v402_v3   ;;  %v391_v10 = vld [vmem:[%s1898_s1 + $0x8] sm:$0xff] (!%p342_p9)  ;;  %v608_v11 = vld [vmem:[%s1900_s3] sm:$0xff] (!%p342_p9)  ;;  %v401_v17 = vld [vmem:[%s1899_s2 + $0x18] sm:$0xff] (!%p342_p9)  ;;  %s1855_s22 = scalar_lea.hbm (!%p342_p9), %s1908_s11, %s1261_s13  ;;  %s1477_s21 = smov (!%p342_p9), [#allocation2]  }
  0x12   : > { %v612_v12 = vld [vmem:[%s1901_s4] sm:$0xff] (!%p342_p9)  ;;  %v613_v13 = vld [vmem:[%s1901_s4 + $0x8] sm:$0xff] (!%p342_p9)  ;;  %v393_v18 = vld [vmem:[%s1898_s1 + $0x18] sm:$0xff] (!%p342_p9)  ;;  %s1415_s30 = sshll.u32 (!%p342_p9), %s1477_s21, 4  ;;  %s1416_s30 = int_to_ptr.vmem [resolvable:$false] %s1415_s30 }
  0x13   : > { %v609_v15 = vld [vmem:[%s1900_s3 + $0x8] sm:$0xff] (!%p342_p9)  ;;  %v610_v19 = vld [vmem:[%s1900_s3 + $0x10] sm:$0xff] (!%p342_p9)  ;;  %v405_v21 = vld [vmem:[%s1899_s2 + $0x38] sm:$0xff] (!%p342_p9) }
  0x14   : > { %v404_v20 = vld [vmem:[%s1899_s2 + $0x30] sm:$0xff] (!%p342_p9)  ;;  %v394_v22 = vld [vmem:[%s1898_s1 + $0x20] sm:$0xff] (!%p342_p9)  ;;  %v611_v23 = vld [vmem:[%s1900_s3 + $0x18] sm:$0xff] (!%p342_p9) }
  0x15   : > { %413 = vperm.xlu0 (!%p342_p9), %1329, %v399_v8   ;;  %433 = vperm.xlu1 (!%p342_p9), %1330, %v403_v9   ;;  %v614_v24 = vld [vmem:[%s1901_s4 + $0x10] sm:$0xff] (!%p342_p9)  ;;  %v615_v25 = vld [vmem:[%s1901_s4 + $0x18] sm:$0xff] (!%p342_p9)  ;;  %v395_v26 = vld [vmem:[%s1898_s1 + $0x28] sm:$0xff] (!%p342_p9) }
  0x16   : > { %s1918_s29 = smov (!%p382_p10, %s1233_s29), 3  ;;  %v765_v27 = vld [vmem:[%s1903_s6] sm:$0xff]  ;;  %v766_v28 = vld [vmem:[%s1903_s6 + $0x8] sm:$0xff]  ;;  %v396_v29 = vld [vmem:[%s1898_s1 + $0x30] sm:$0xff] }
  0x17   : > { %s1234_s15 = sshll.u32 %s1918_s29, 3  ;;  %v767_v30 = vld [vmem:[%s1903_s6 + $0x10] sm:$0xff]  ;;  %v768_v31 = vld [vmem:[%s1903_s6 + $0x18] sm:$0xff]  ;;  %v919_v32 = vld [vmem:[%s1905_s8] sm:$0xff]  ;;  %s1232_s29 = sshll.u32 %s378_s12, 3 }
  0x18   : > { %s385_s24 = scalar_lea.vmem %s1897_s0, %s1234_s15  ;;  %v920_v33 = vld [vmem:[%s1905_s8 + $0x8] sm:$0xff]  ;;  %v921_v34 = vld [vmem:[%s1905_s8 + $0x10] sm:$0xff]  ;;  %v922_v35 = vld [vmem:[%s1905_s8 + $0x18] sm:$0xff]  ;;  %s380_s26 = scalar_lea.vmem [#allocation2], %s1232_s29 }
  0x19   : > { %v389_v5 = vld [vmem:[%s385_s24 + $0x8] sm:$0xff]  ;;  %v388_v6 = vld [vmem:[%s385_s24] sm:$0xff]  ;;  %618 = vperm.xlu0 %1329, %v612_v12   ;;  %623 = vperm.xlu1 %1330, %v613_v13   ;;  %s1169_s14 = sshll.u32 %s380_s26, 4  ;;  %s1155_s24 = scalar_lea.sflag [#allocation3], %s378_s12  ;;  %s1857_s14 = int_to_ptr.vmem [resolvable:$true] %s1169_s14 }
  0x1a   : > { %471 = vmatprep.subr.mxu0 %v389_v5  ;;  %1286 = vmatprep.subr.mxu1 %v389_v5  ;;  %v1069_v36 = vld [vmem:[%s1907_s10] sm:$0xf]  ;;  %s1411_s25 = scalar_lea.vmem %s1857_s14, 128  ;;  %s1417_s29 = scalar_lea.vmem %s1416_s30, 256 }
  0x1b   : > { %472 = vmatpush1.msra.mxu0 %v388_v6  ;;  %1287 = vmatpush1.msra.mxu1 %v388_v6  ;;  %p1412_p11 = scmp.ne.s32.totalorder %s1857_s14, %s1411_s25  ;;  %p1418_p0 = scmp.lt.s32.totalorder %s1857_s14, %s1416_s30 }
  0x1c   : > { %1235 = vmatmul.mubr.msk.f32.vlgmr.msra.gmra.mrb[0].mxu0 %vm446_vm0, %v390_v4  ;;  %1242 = vmatmul.mubr.msk.f32.vlgmr.msra.gmra.mrb[0].mxu1 %vm446_vm0, %v397_v7  ;;  %p1419_p1 = scmp.lt.s32.totalorder %s1417_s29, %s1411_s25 }
  0x1d   : > { %648 = vmatprep.subr.mxu1 %v389_v5  ;;  %541 = vmatprep.mubr.f32.mxu0 %v1475_v0  ;;  %p1413_p12 = pnand %p1412_p11, %p1576_p5 }
  0x1e   : > { %649 = vmatpush1.msra.mxu1 %v388_v6  ;;  %712 = vmatprep.mubr.f32.mxu1 %v1475_v0  ;;  %p1420_p2 = por %p1419_p1, %p1418_p0 }
  0x1f   : > { %418 = vperm.xlu0 %1329, %v400_v16   ;;  %423 = vperm.xlu1 %1330, %v401_v17   ;;  %p1414_p13 = pneg %p1413_p12 }
  0x20   : > { %1236 = vmatmul.mubr.msk.f32.gmra.mrb[2].mxu0 %vm446_vm0, %v391_v10  ;;  %1243 = vmatmul.mubr.msk.f32.vlgmr.msra.gmra.mrb[2].mxu1 %vm446_vm0, %v608_v11 }
  0x21   : > { %547 = vmatprep.mubr.f32.mxu0 %v1475_v0  ;;  %718 = vmatprep.mubr.f32.mxu1 %v1475_v0  ;;  %p1421_p3 = pnand %p1420_p2, %p1414_p13 }
  0x23   : > { %438 = vperm.xlu0 %1329, %v404_v20   ;;  %443 = vperm.xlu1 %1330, %v405_v21  }
  0x24   : > { %1237 = vmatmul.mubr.msk.f32.gmra.mrb[4].mxu0 %vm446_vm0, %v392_v14  ;;  %1244 = vmatmul.mubr.msk.f32.gmra.mrb[4].mxu1 %vm446_vm0, %v609_v15 }
  0x25   : > { %553 = vmatprep.mubr.f32.mxu0 %v1475_v0  ;;  %724 = vmatprep.mubr.f32.mxu1 %v1475_v0 }
  0x27   : > { %628 = vperm.xlu0 %1329, %v614_v24   ;;  %633 = vperm.xlu1 %1330, %v615_v25  }
  0x28   : > { %1238 = vmatmul.mubr.msk.f32.gmra.mrb[6].mxu0 %vm446_vm0, %v393_v18  ;;  %1245 = vmatmul.mubr.msk.f32.gmra.mrb[6].mxu1 %vm446_vm0, %v610_v19 }
  0x29   : > { %559 = vmatprep.mubr.f32.mxu0 %v1475_v0  ;;  %730 = vmatprep.mubr.f32.mxu1 %v1475_v0 }
  0x2b   : > { %771 = vperm.xlu0 %1329, %v765_v27   ;;  %776 = vperm.xlu1 %1330, %v766_v28  }
  0x2c   : > { %1239 = vmatmul.mubr.msk.f32.gmra.mrb[8].mxu0 %vm446_vm0, %v394_v22  ;;  %1246 = vmatmul.mubr.msk.f32.gmra.mrb[8].mxu1 %vm446_vm0, %v611_v23 }
  0x2d   : > { %565 = vmatprep.mubr.f32.mxu0 %v1475_v0  ;;  %866 = vmatprep.mubr.f32.mxu1 %v1475_v0 }
  0x2f   : > { %781 = vperm.xlu0 %1329, %v767_v30   ;;  %786 = vperm.xlu1 %1330, %v768_v31  }
  0x30   : > { %1240 = vmatmul.mubr.msk.f32.gmra.mrb[10].mxu0 %vm446_vm0, %v395_v26 }
  0x31   : > { %571 = vmatprep.mubr.f32.mxu0 %v1475_v0 }
  0x33   : > { %925 = vperm.xlu0 %1329, %v919_v32   ;;  %930 = vperm.xlu1 %1330, %v920_v33  }
  0x34   : > { %1241 = vmatmul.mubr.msk.f32.gmra.mrb[12].mxu0 %vm446_vm0, %v396_v29 }
  0x35   : > { %1019 = vmatprep.mubr.f32.mxu0 %v1475_v0 }
  0x37   : > { %935 = vperm.xlu0 %1329, %v921_v34   ;;  %940 = vperm.xlu1 %1330, %v922_v35  }
  0x3b   : > { %1072 = vperm.xlu0 %1329, %v1069_v36  }
  0x90   : > { %v429_v37 = vpop.permute.xlu1 %428  ;;  %v409_v39 = vpop.permute.xlu0 %408 }
  0x94   : > { %v1715_v38 = vpop.permute.xlu1 %433  ;;  %v414_v41 = vpop.permute.xlu0 %413 }
  0x98   : > { %v624_v40 = vpop.permute.xlu1 %623  ;;  %v619_v47 = vpop.permute.xlu0 %618 }
  0x9e   : > { %v424_v42 = vpop.permute.xlu1 %423  ;;  %v419_v1 = vpop.permute.xlu0 %418 }
  0xa2   : > { %v444_v48 = vpop.permute.xlu1 %443  ;;  %v439_v19 = vpop.permute.xlu0 %438 }
  0xa6   : > { %v634_v24 = vpop.permute.xlu1 %633  ;;  %v629_v35 = vpop.permute.xlu0 %628 }
  0xef   : > { %v537_v43 = vpop.f32.mrb[0].mxu0  ;;  %v579_v44 = vpop.f32.mrb[0].mxu1 }
  0xf0   : > { %v539_v45 = vpop.f32.mrb[1].mxu0  ;;  %v581_v46 = vpop.f32.mrb[1].mxu1  ;;  %v538_v49 = vadd.f32 %v537_v43, %v409_v39  ;;  %v580_v53 = vadd.f32 %v579_v44, %v444_v48 }
  0xf1   : > { %v540_v50 = vadd.f32 %v539_v45, %v409_v39  ;;  %v582_v56 = vadd.f32 %v581_v46, %v444_v48 }
  0xf2   : > { %1331 = vtanh.f32 %v538_v49 }
  0xf3   : > { %v543_v51 = vpop.f32.mrb[2].mxu0  ;;  %v714_v52 = vpop.f32.mrb[2].mxu1  ;;  %1333 = vtanh.f32 %v540_v50 }
  0xf4   : > { %v545_v54 = vpop.f32.mrb[3].mxu0  ;;  %v716_v55 = vpop.f32.mrb[3].mxu1  ;;  %v544_v57 = vadd.f32 %v543_v51, %v414_v41  ;;  %1335 = vtanh.f32 %v580_v53  ;;  %v715_v61 = vadd.f32 %v714_v52, %v619_v47 }
  0xf5   : > { %v546_v58 = vadd.f32 %v545_v54, %v414_v41  ;;  %1337 = vtanh.f32 %v582_v56  ;;  %v717_v2 = vadd.f32 %v716_v55, %v619_v47 }
  0xf6   : > { %1339 = vtanh.f32 %v544_v57 }
  0xf7   : > { %v549_v59 = vpop.f32.mrb[4].mxu0  ;;  %v720_v60 = vpop.f32.mrb[4].mxu1  ;;  %1341 = vtanh.f32 %v546_v58 }
  0xf8   : > { %v551_v62 = vpop.f32.mrb[5].mxu0  ;;  %v722_v63 = vpop.f32.mrb[5].mxu1  ;;  %v550_v3 = vadd.f32 %v549_v59, %v419_v1  ;;  %v721_v4 = vadd.f32 %v720_v60, %v624_v40  ;;  %1343 = vtanh.f32 %v715_v61 }
  0xf9   : > { %v552_v7 = vadd.f32 %v551_v62, %v419_v1  ;;  %1345 = vtanh.f32 %v717_v2  ;;  %v723_v10 = vadd.f32 %v722_v63, %v624_v40 }
  0xfa   : > { %1347 = vtanh.f32 %v550_v3 }
  0xfb   : > { %v555_v5 = vpop.f32.mrb[6].mxu0  ;;  %v726_v6 = vpop.f32.mrb[6].mxu1  ;;  %1349 = vtanh.f32 %v721_v4 }
  0xfc   : > { %v557_v8 = vpop.f32.mrb[7].mxu0  ;;  %v728_v9 = vpop.f32.mrb[7].mxu1  ;;  %v556_v11 = vadd.f32 %v555_v5, %v424_v42  ;;  %1351 = vtanh.f32 %v552_v7  ;;  %v727_v39 = vadd.f32 %v726_v6, %v629_v35 }
  0xfd   : > { %v1332_v14 = vpop.eup %1331  ;;  %1353 = vtanh.f32 %v723_v10  ;;  %v558_v20 = vadd.f32 %v557_v8, %v424_v42  ;;  %v729_v43 = vadd.f32 %v728_v9, %v629_v35 }
  0xfe   : > { %v1334_v18 = vpop.eup %1333 }
  0xff   : > { %v561_v12 = vpop.f32.mrb[8].mxu0  ;;  %v732_v13 = vpop.f32.mrb[8].mxu1 }
 0x100   : > { %v562_v15 = vadd.f32 %v561_v12, %v429_v37  ;;  %v563_v16 = vpop.f32.mrb[9].mxu0  ;;  %v734_v17 = vpop.f32.mrb[9].mxu1  ;;  %v733_v27 = vadd.f32 %v732_v13, %v634_v24 }
 0x101   : > { %v564_v21 = vadd.f32 %v563_v16, %v429_v37  ;;  %v1717_v22 = vpop.eup %1335  ;;  %v735_v31 = vadd.f32 %v734_v17, %v634_v24 }
 0x102   : > { %1355 = vtanh.f32 %v562_v15  ;;  %v1719_v23 = vpop.eup %1337 }
 0x103   : > { %1357 = vtanh.f32 %v556_v11  ;;  %v567_v25 = vpop.f32.mrb[10].mxu0  ;;  %v1340_v26 = vpop.eup %1339 }
 0x104   : > { %1359 = vtanh.f32 %v564_v21  ;;  %v568_v28 = vadd.f32 %v567_v25, %v1715_v38  ;;  %v569_v29 = vpop.f32.mrb[11].mxu0  ;;  %v1342_v30 = vpop.eup %1341  ;;  %v761_v25 = vld [vmem:[%s1902_s5] sm:$0xff] }
 0x105   : > { %1361 = vtanh.f32 %v558_v20  ;;  %v570_v32 = vadd.f32 %v569_v29, %v1715_v38  ;;  %v1344_v33 = vpop.eup %1343  ;;  %v772_v29 = vpop.permute.xlu0 %771 }
 0x106   : > { %1363 = vtanh.f32 %v568_v28  ;;  %v1346_v34 = vpop.eup %1345  ;;  %v764_v28 = vld [vmem:[%s1902_s5 + $0x18] sm:$0xff] }
 0x107   : > { %1365 = vtanh.f32 %v570_v32  ;;  %v573_v36 = vpop.f32.mrb[12].mxu0  ;;  %v1348_v37 = vpop.eup %1347 }
 0x108   : > { %1367 = vtanh.f32 %v733_v27  ;;  %v574_v40 = vadd.f32 %v573_v36, %v439_v19  ;;  %v575_v41 = vpop.f32.mrb[13].mxu0  ;;  %v1350_v42 = vpop.eup %1349  ;;  %v763_v27 = vld [vmem:[%s1902_s5 + $0x10] sm:$0xff] }
 0x109   : > { %1369 = vtanh.f32 %v735_v31  ;;  %v576_v44 = vadd.f32 %v575_v41, %v439_v19  ;;  %v1352_v45 = vpop.eup %1351 }
 0x10a   : > { %1371 = vtanh.f32 %v574_v40  ;;  %v1354_v46 = vpop.eup %1353  ;;  %v782_v40 = vpop.permute.xlu0 %781 }
 0x10b   : > { %1373 = vtanh.f32 %v576_v44 }
 0x10c   : > { %v1723_v38 = vpop.eup %1355  ;;  %1375 = vtanh.f32 %v727_v39 }
 0x10d   : > { %v1358_v47 = vpop.eup %1357  ;;  %1377 = vtanh.f32 %v729_v43  ;;  %v1726_v48 = vsub.f32 %v1332_v14, %v1723_v38 }
 0x10e   : > { %v1728_v49 = vpop.eup %1359  ;;  %v1746_v60 = vsub.f32 %v1358_v47, %v1717_v22 }
 0x10f   : > { %v1362_v50 = vpop.eup %1361  ;;  %v1731_v51 = vsub.f32 %v1334_v18, %v1728_v49  ;;  %v745_v55 = vmul.f32 %v1344_v33, %v1726_v48 }
 0x110   : > { %v1733_v52 = vpop.eup %1363  ;;  %v1752_v63 = vsub.f32 %v1362_v50, %v1719_v23 }
 0x111   : > { %v1735_v53 = vpop.eup %1365  ;;  %v1738_v54 = vsub.f32 %v1340_v26, %v1733_v52  ;;  %v746_v58 = vmul.f32 %v1346_v34, %v1731_v51  ;;  %v753_v3 = vadd.f32 %v1723_v38, %v745_v55  ;;  %v762_v26 = vld [vmem:[%s1902_s5 + $0x8] sm:$0xff]  ;;  %v777_v34 = vpop.permute.xlu1 %776 }
 0x112   : > { %v1368_v56 = vpop.eup %1367  ;;  %v1742_v57 = vsub.f32 %v1342_v30, %v1735_v53 }
 0x113   : > { %v1370_v59 = vpop.eup %1369  ;;  %v747_v61 = vmul.f32 %v1350_v42, %v1738_v54  ;;  %v751_v6 = vmul.f32 %v1368_v56, %v1746_v60  ;;  %v754_v8 = vadd.f32 %v1728_v49, %v746_v58 }
 0x114   : > { %v1749_v62 = vpop.eup %1371  ;;  %v748_v1 = vmul.f32 %v1354_v46, %v1742_v57  ;;  %v752_v11 = vmul.f32 %v1370_v59, %v1752_v63 }
 0x115   : > { %v1755_v2 = vpop.eup %1373  ;;  %v755_v4 = vadd.f32 %v1733_v52, %v747_v61  ;;  %v1760_v5 = vsub.f32 %v1348_v37, %v1749_v62  ;;  %v759_v18 = vadd.f32 %v1717_v22, %v751_v6 }
 0x116   : > { %v1376_v7 = vpop.eup %1375  ;;  %v756_v9 = vadd.f32 %v1735_v53, %v748_v1  ;;  %v1766_v10 = vsub.f32 %v1352_v45, %v1755_v2  ;;  %v760_v20 = vadd.f32 %v1719_v23, %v752_v11  ;;  %v787_v45 = vpop.permute.xlu1 %786 }
 0x117   : > { %v1378_v12 = vpop.eup %1377  ;;  %v1264_v13 = vpack.c.bf16 %v755_v4, %v753_v3  ;;  %v749_v14 = vmul.f32 %v1376_v7, %v1760_v5 }
 0x118   : > { %v1262_v15 = vpack.c.bf16 %v756_v9, %v754_v8  ;;  %v750_v16 = vmul.f32 %v1378_v12, %v1766_v10 }
 0x119   : > { %v757_v17 = vadd.f32 %v1749_v62, %v749_v14 }
 0x11a   : > { %1263 = vmatprep.subr.bf16.mxu1 %v1262_v15  ;;  %v758_v19 = vadd.f32 %v1755_v2, %v750_v16 }
 0x11b   : > { %1265 = vmatpush1.bf16.msra.mxu1 %v1264_v13  ;;  %v1268_v21 = vpack.c.bf16 %v759_v18, %v757_v17 }
 0x11c   : > { %v1266_v24 = vpack.c.bf16 %v760_v20, %v758_v19 }
 0x11e   : > { %1267 = vmatprep.subr.bf16.mxu1 %v1266_v24 }
 0x11f   : > { %1269 = vmatpush1.bf16.msra.mxu1 %v1268_v21 }
 0x122   : > { %1247 = vmatmul.mubr.msk.f32.vlgmr.msra.gmra.mrb[10].mxu1 %vm789_vm1, %v761_v25 }
 0x123   : > { %872 = vmatprep.mubr.f32.mxu1 %v1475_v0 }
 0x126   : > { %1248 = vmatmul.mubr.msk.f32.gmra.mrb[12].mxu1 %vm789_vm1, %v762_v26 }
 0x127   : > { %878 = vmatprep.mubr.f32.mxu1 %v1475_v0 }
 0x12a   : > { %1249 = vmatmul.mubr.msk.f32.gmra.mrb[14].mxu1 %vm789_vm1, %v763_v27 }
 0x12b   : > { %884 = vmatprep.mubr.f32.mxu1 %v1475_v0 }
 0x12e   : > { %1250 = vmatmul.mubr.msk.f32.gmra.mrb[16].mxu1 %vm789_vm1, %v764_v28 }
 0x12f   : > { %1142 = vmatprep.mubr.f32.mxu1 %v1475_v0 }
 0x1f5   : > { %v868_v30 = vpop.f32.mrb[10].mxu1 }
 0x1f6   : > { %v869_v31 = vadd.f32 %v868_v30, %v772_v29  ;;  %v870_v32 = vpop.f32.mrb[11].mxu1  ;;  %v915_v30 = vld [vmem:[%s1904_s7] sm:$0xff] }
 0x1f7   : > { %v871_v33 = vadd.f32 %v870_v32, %v772_v29  ;;  %v917_v32 = vld [vmem:[%s1904_s7 + $0x10] sm:$0xff] }
 0x1f8   : > { %1379 = vtanh.f32 %v869_v31  ;;  %v916_v31 = vld [vmem:[%s1904_s7 + $0x8] sm:$0xff] }
 0x1f9   : > { %1381 = vtanh.f32 %v871_v33  ;;  %v874_v35 = vpop.f32.mrb[12].mxu1  ;;  %v918_v33 = vld [vmem:[%s1904_s7 + $0x18] sm:$0xff] }
 0x1fa   : > { %v875_v36 = vadd.f32 %v874_v35, %v777_v34  ;;  %v876_v37 = vpop.f32.mrb[13].mxu1 }
 0x1fb   : > { %v877_v39 = vadd.f32 %v876_v37, %v777_v34  ;;  %v926_v34 = vpop.permute.xlu0 %925 }
 0x1fc   : > { %1383 = vtanh.f32 %v875_v36 }
 0x1fd   : > { %1385 = vtanh.f32 %v877_v39  ;;  %v880_v41 = vpop.f32.mrb[14].mxu1 }
 0x1fe   : > { %v881_v42 = vadd.f32 %v880_v41, %v782_v40  ;;  %v882_v43 = vpop.f32.mrb[15].mxu1 }
 0x1ff   : > { %v883_v44 = vadd.f32 %v882_v43, %v782_v40  ;;  %v931_v40 = vpop.permute.xlu1 %930 }
 0x200   : > { %1387 = vtanh.f32 %v881_v42 }
 0x201   : > { %1389 = vtanh.f32 %v883_v44  ;;  %v886_v46 = vpop.f32.mrb[16].mxu1 }
 0x202   : > { %v1380_v47 = vpop.eup %1379  ;;  %v887_v50 = vadd.f32 %v886_v46, %v787_v45  ;;  %v888_v55 = vpop.f32.mrb[17].mxu1 }
 0x203   : > { %v1382_v56 = vpop.eup %1381  ;;  %v889_v58 = vadd.f32 %v888_v55, %v787_v45  ;;  %v899_v59 = vmul.f32 %v1380_v47, %v1726_v48  ;;  %v941_v55 = vpop.permute.xlu1 %940 }
 0x204   : > { %1391 = vtanh.f32 %v887_v50  ;;  %v900_v1 = vmul.f32 %v1382_v56, %v1731_v51 }
 0x205   : > { %1393 = vtanh.f32 %v889_v58  ;;  %v907_v7 = vadd.f32 %v1723_v38, %v899_v59 }
 0x206   : > { %v1384_v61 = vpop.eup %1383  ;;  %v908_v11 = vadd.f32 %v1728_v49, %v900_v1 }
 0x207   : > { %v1386_v3 = vpop.eup %1385  ;;  %v901_v4 = vmul.f32 %v1384_v61, %v1738_v54 }
 0x208   : > { %v902_v6 = vmul.f32 %v1386_v3, %v1742_v57 }
 0x209   : > { %v909_v8 = vadd.f32 %v1733_v52, %v901_v4 }
 0x20a   : > { %v1388_v9 = vpop.eup %1387  ;;  %v910_v12 = vadd.f32 %v1735_v53, %v902_v6 }
 0x20b   : > { %v1390_v13 = vpop.eup %1389  ;;  %v1272_v14 = vpack.c.bf16 %v909_v8, %v907_v7  ;;  %v903_v16 = vmul.f32 %v1388_v9, %v1760_v5 }
 0x20c   : > { %v1270_v15 = vpack.c.bf16 %v910_v12, %v908_v11  ;;  %v904_v18 = vmul.f32 %v1390_v13, %v1766_v10 }
 0x20d   : > { %v911_v24 = vadd.f32 %v1749_v62, %v903_v16 }
 0x20e   : > { %v1392_v17 = vpop.eup %1391  ;;  %1271 = vmatprep.subr.bf16.mxu0 %v1270_v15  ;;  %v912_v26 = vadd.f32 %v1755_v2, %v904_v18 }
 0x20f   : > { %v1394_v19 = vpop.eup %1393  ;;  %1273 = vmatpush1.bf16.msra.mxu0 %v1272_v14  ;;  %v905_v20 = vmul.f32 %v1392_v17, %v1746_v60 }
 0x210   : > { %v906_v21 = vmul.f32 %v1394_v19, %v1752_v63 }
 0x211   : > { %v913_v25 = vadd.f32 %v1717_v22, %v905_v20 }
 0x212   : > { %v914_v27 = vadd.f32 %v1719_v23, %v906_v21 }
 0x213   : > { %v1276_v28 = vpack.c.bf16 %v913_v25, %v911_v24 }
 0x214   : > { %v1274_v29 = vpack.c.bf16 %v914_v27, %v912_v26 }
 0x216   : > { %1275 = vmatprep.subr.bf16.mxu0 %v1274_v29 }
 0x217   : > { %1277 = vmatpush1.bf16.msra.mxu0 %v1276_v28 }
 0x21a   : > { %1251 = vmatmul.mubr.msk.f32.vlgmr.msra.gmra.mrb[14].mxu0 %vm789_vm1, %v915_v30 }
 0x21b   : > { %1025 = vmatprep.mubr.f32.mxu0 %v1475_v0 }
 0x21e   : > { %1252 = vmatmul.mubr.msk.f32.gmra.mrb[16].mxu0 %vm789_vm1, %v916_v31 }
 0x21f   : > { %1031 = vmatprep.mubr.f32.mxu0 %v1475_v0 }
 0x222   : > { %1253 = vmatmul.mubr.msk.f32.gmra.mrb[18].mxu0 %vm789_vm1, %v917_v32 }
 0x223   : > { %1037 = vmatprep.mubr.f32.mxu0 %v1475_v0  ;;  %v936_v0 = vpop.permute.xlu0 %935 }
 0x226   : > { %1254 = vmatmul.mubr.msk.f32.gmra.mrb[20].mxu0 %vm789_vm1, %v918_v33 }
 0x2ed   : > { %v1021_v35 = vpop.f32.mrb[14].mxu0 }
 0x2ee   : > { %v1022_v36 = vadd.f32 %v1021_v35, %v926_v34  ;;  %v1023_v37 = vpop.f32.mrb[15].mxu0 }
 0x2ef   : > { %v1024_v39 = vadd.f32 %v1023_v37, %v926_v34 }
 0x2f0   : > { %1395 = vtanh.f32 %v1022_v36 }
 0x2f1   : > { %1397 = vtanh.f32 %v1024_v39  ;;  %v1027_v41 = vpop.f32.mrb[16].mxu0 }
 0x2f2   : > { %v1028_v42 = vadd.f32 %v1027_v41, %v931_v40  ;;  %v1029_v43 = vpop.f32.mrb[17].mxu0 }
 0x2f3   : > { %v1030_v44 = vadd.f32 %v1029_v43, %v931_v40 }
 0x2f4   : > { %1399 = vtanh.f32 %v1028_v42 }
 0x2f5   : > { %1401 = vtanh.f32 %v1030_v44  ;;  %v1033_v45 = vpop.f32.mrb[18].mxu0 }
 0x2f6   : > { %v1034_v46 = vadd.f32 %v1033_v45, %v936_v0  ;;  %v1035_v47 = vpop.f32.mrb[19].mxu0 }
 0x2f7   : > { %v1036_v50 = vadd.f32 %v1035_v47, %v936_v0 }
 0x2f8   : > { %1403 = vtanh.f32 %v1034_v46 }
 0x2f9   : > { %1405 = vtanh.f32 %v1036_v50  ;;  %v1039_v56 = vpop.f32.mrb[20].mxu0 }
 0x2fa   : > { %v1396_v58 = vpop.eup %1395  ;;  %v1040_v59 = vadd.f32 %v1039_v56, %v941_v55  ;;  %v1041_v61 = vpop.f32.mrb[21].mxu0 }
 0x2fb   : > { %v1398_v1 = vpop.eup %1397  ;;  %v1042_v3 = vadd.f32 %v1041_v61, %v941_v55  ;;  %v1052_v4 = vmul.f32 %v1396_v58, %v1726_v48 }
 0x2fc   : > { %1407 = vtanh.f32 %v1040_v59  ;;  %v1053_v7 = vmul.f32 %v1398_v1, %v1731_v51 }
 0x2fd   : > { %1409 = vtanh.f32 %v1042_v3  ;;  %v1060_v12 = vadd.f32 %v1723_v38, %v1052_v4 }
 0x2fe   : > { %v1400_v6 = vpop.eup %1399  ;;  %v1061_v15 = vadd.f32 %v1728_v49, %v1053_v7 }
 0x2ff   : > { %v1402_v8 = vpop.eup %1401  ;;  %v1054_v9 = vmul.f32 %v1400_v6, %v1738_v54 }
 0x300   : > { %v1055_v11 = vmul.f32 %v1402_v8, %v1742_v57 }
 0x301   : > { %v1062_v13 = vadd.f32 %v1733_v52, %v1054_v9 }
 0x302   : > { %v1404_v14 = vpop.eup %1403  ;;  %v1063_v16 = vadd.f32 %v1735_v53, %v1055_v11 }
 0x303   : > { %v1406_v17 = vpop.eup %1405  ;;  %v1280_v18 = vpack.c.bf16 %v1062_v13, %v1060_v12  ;;  %v1056_v19 = vmul.f32 %v1404_v14, %v1760_v5 }
 0x304   : > { %v1278_v48 = vpack.c.bf16 %v1063_v16, %v1061_v15  ;;  %v1057_v54 = vmul.f32 %v1406_v17, %v1766_v10  ;;  %v1068_v10 = vld [vmem:[%s1906_s9] sm:$0xf] }
 0x305   : > { %v1064_v49 = vadd.f32 %v1749_v62, %v1056_v19 }
 0x306   : > { %v1408_v51 = vpop.eup %1407  ;;  %1279 = vmatprep.subr.bf16.mxu1 %v1278_v48  ;;  %v1065_v20 = vadd.f32 %v1755_v2, %v1057_v54 }
 0x307   : > { %v1410_v57 = vpop.eup %1409  ;;  %1281 = vmatpush1.bf16.msra.mxu1 %v1280_v18  ;;  %v1058_v38 = vmul.f32 %v1408_v51, %v1746_v60  ;;  %v1073_v60 = vpop.permute.xlu0 %1072 }
 0x308   : > { %v1059_v52 = vmul.f32 %v1410_v57, %v1752_v63 }
 0x309   : > { %v1066_v53 = vadd.f32 %v1717_v22, %v1058_v38 }
 0x30a   : > { %v1067_v5 = vadd.f32 %v1719_v23, %v1059_v52 }
 0x30b   : > { %v1284_v21 = vpack.c.bf16 %v1066_v53, %v1064_v49 }
 0x30c   : > { %v1282_v24 = vpack.c.bf16 %v1067_v5, %v1065_v20 }
 0x30e   : > { %1283 = vmatprep.subr.bf16.mxu1 %v1282_v24 }
 0x30f   : > { %1285 = vmatpush1.bf16.msra.mxu1 %v1284_v21 }
 0x312   : > { %1255 = vmatmul.mubr.msk.f32.vlgmr.msra.gmra.mrb[18].mxu1 %vm789_vm1, %v1068_v10 }
 0x3e5   : > { %v1144_v62 = vpop.f32.mrb[18].mxu1 }
 0x3e6   : > { %v1145_v22 = vadd.f32 %v1144_v62, %v1073_v60  ;;  %v1146_v63 = vpop.f32.mrb[19].mxu1 }
 0x3e7   : > { %v1147_v23 = vadd.f32 %v1146_v63, %v1073_v60 }
 0x3e9   : > { %v1151_v2 = vcombine.low %v1145_v22, %v1147_v23 }
 0x3eb   : > { %1153 = vst [vmem:[%s380_s26] sm:$0xff] %v1151_v2 }
 0x3ec   : > { %1424 = shalt.err (!%p1421_p3)
}
 0x3ed   : > { %s1425_s12 = scalar_lea.hbm %s1855_s22, 128  ;;  %s1429_s15 = scalar_lea.hbm %s1908_s11, 256 }
 0x3ee   : > { %p1426_p4 = scmp.ne.s32.totalorder %s1855_s22, %s1425_s12  ;;  %p1430_p9 = scmp.lt.u32.totalorder %s1855_s22, %s1908_s11 }
 0x3ef   : > { %p1431_p10 = scmp.lt.u32.totalorder %s1429_s15, %s1425_s12  ;;  %p1433_p12 = scmp.lt.u32.totalorder %s1425_s12, %s1855_s22 }
 0x3f0   : > { %p1427_p7 = pnand %p1426_p4, %p1576_p5 }
 0x3f1   : > { %p1432_p11 = por %p1431_p10, %p1430_p9 }
 0x3f2   : > { %p1428_p8 = pneg %p1427_p7 }
 0x3f3   : > { %p1434_p13 = por %p1433_p12, %p1432_p11 }
 0x3f5   : > { %p1435_p0 = pnand %p1434_p13, %p1428_p8 }
 0x3f7   : > { %1438 = shalt.err (!%p1435_p0)
}
 0x3f8   : > { %1288 = dma.vmem_to_hbm [thread:$0]  (%p1576_p5), %s1857_s14, 128, %s1855_s22, %s1155_s24  }
 0x3f9 PF: > { %p1294_p1 = scmp.ge.s32.totalorder %s1473_s20, 2  ;;  %s1181_s25 = sand.u32 1, %s1461_s17  }
 0x3fa   : > { %s1182_s30 = scalar_lea.sflag [#allocation3], %s1181_s25 }
 0x3fb   : > { %p1291_p2 = pnand %p1294_p1, %p1580_p6 }
 0x3fd   : > { %1456 = dma.done.wait (!%p1291_p2), %s1182_s30, 128  }
 0x3fe   : > { %1458 = vsyncadd (!%p1291_p2), %s1182_s30, 4294967168  ;;  %s1912_s29 = sld [smem:[#allocation5_spill]]  ;;  %p21_p3 = scmp.ge.s32.totalorder %s1563_s23, 4  }
 0x3ff   : > { %s1913_s17 = smov %s1465_s18  ;;  %s1914_s18 = smov %s1469_s19 }
 0x400   : > { %s1916_s20 = smov %s1563_s23  ;;  %23 = sbr.rel (!%p21_p3) target bundleno = 3 (0x3), region = 99 }
 0x404   : > { %s1915_s19 = smov %s1912_s29 }
 0x407   :  { %1187 = vsyncpa [#allocation3], 1 }
 0x408   :  { %1189 = vsyncpa [#allocation3 + $0x1], 1 }

</bundles_post_ra>
